<compile_context>
chip_gen: v7x
topology: tpu7x:2x2x1
jax: 0.10.0
libtpu: 0.0.40
codegen_flags: <defaults>
</compile_context>

<pallas_src>
import functools

import jax
import jax.numpy as jnp
from jax.experimental import pallas as pl
from jax.experimental.pallas import tpu as pltpu


def moe_adaptor_kernel(x_ref, wgate_ref, wcat_ref, bproj_ref, o_ref, *,
                       n_exps, d_pad):
    """One batch tile: gating softmax + single folded expert contraction."""
    x = x_ref[...]                                    # (TB, D_in), native dtype
    w_dtype = wcat_ref.dtype
    x_mx = x.astype(w_dtype)                          # cast only at the MXU

    # ---- gating: softmax(x @ w_gate) ----
    logits = jnp.dot(x_mx, wgate_ref[...],
                     preferred_element_type=jnp.float32)          # (TB, E) f32
    logits = logits - jnp.max(logits, axis=-1, keepdims=True)
    expl = jnp.exp(logits)
    gates = expl * pl.reciprocal(jnp.sum(expl, axis=-1, keepdims=True),
                                 approx=False)                     # (TB, E) f32

    # ---- all experts in ONE lane-dense MXU contraction ----
    # wcat is pre-laid-out as (D_in, E*Dp); expert e owns the lane-aligned
    # column block [e*Dp, (e+1)*Dp) -> no in-kernel concat / reshape / relayout.
    y = jnp.dot(x_mx, wcat_ref[...],
                preferred_element_type=jnp.float32)                # (TB, E*Dp)

    # ---- gate-weighted combine: E full-vreg FMAs (pure f32 VPU work) ----
    acc = gates[:, 0:1] * y[:, 0:d_pad]
    for e in range(1, n_exps):
        acc = acc + gates[:, e:e + 1] * y[:, e * d_pad:(e + 1) * d_pad]

    # ---- PW bias, folded algebraically ----
    # sum_e g_e * ((x - b_e) @ W_e) = sum_e g_e * (x @ W_e) - gates @ (b_e @ W_e)
    acc = acc - jnp.dot(gates, bproj_ref[...],
                        preferred_element_type=jnp.float32)
    o_ref[...] = acc.astype(o_ref.dtype)


def _pick_batch_tile(batch):
    """Multiple-of-8 divisor of `batch`, capped at 256 rows; prefer >= 4 grid
    steps (2 per v7x TensorCore) when tiles can stay >= 128 rows."""
    if batch <= 8 or batch % 8 != 0:
        return batch
    cap = 256
    tb = 8
    for cand in range(8, min(batch, cap) + 1, 8):
        if batch % cand == 0:
            tb = cand
    if batch // tb < 4:
        for cand in range(tb - 8, 127, -8):
            if batch % cand == 0 and batch // cand >= 4:
                tb = cand
                break
    return tb


def _vmem_limit_bytes(tb, d_in, n_exps, d_pad, x_itemsize, w_itemsize):
    """Explicit scoped-VMEM budget: double-buffered I/O blocks + resident
    (double-buffered) weights + f32 intermediates, with 2x headroom."""
    io = 2 * tb * (d_in + d_pad) * x_itemsize
    weights = 2 * (d_in * n_exps * w_itemsize            # w_gate
                   + d_in * n_exps * d_pad * w_itemsize  # folded expert weights
                   + n_exps * d_pad * 4)                 # bias_proj (f32)
    scratch = (tb * n_exps * d_pad * 4                   # y (f32 MXU result)
               + 2 * tb * d_pad * 4                      # acc + correction
               + tb * d_in * w_itemsize                  # x cast to weight dtype
               + 4 * tb * n_exps * 4)                    # logits / gates
    est = io + weights + scratch
    # floor 16 MiB, cap 48 MiB (safe on v7x: 64 MiB physical VMEM)
    return int(min(48 * 2**20, max(2 * est, 16 * 2**20)))


def prepare_moe_adaptor_params(w_gate, bias, w_experts,
                               weight_dtype=jnp.bfloat16):
    """One-time weight preparation; call OUTSIDE the per-step path."""
    n_exps, d_in, d_out = w_experts.shape
    assert w_gate.shape == (d_in, n_exps) and bias.shape == (n_exps, d_in)
    d_pad = pl.cdiv(d_out, 128) * 128
    w_exp = w_experts.astype(jnp.float32)
    if d_pad != d_out:
        w_exp = jnp.pad(w_exp, ((0, 0), (0, 0), (0, d_pad - d_out)))
    # expert-major along lanes: expert e owns columns [e*d_pad, (e+1)*d_pad)
    w_cat = jnp.transpose(w_exp, (1, 0, 2)).reshape(d_in, n_exps * d_pad)
    w_cat = w_cat.astype(weight_dtype)
    # bias_proj[e] = bias[e] @ W[e]; kept in f32 (tiny, preserves accuracy)
    bias_proj = jnp.einsum("ed,edo->eo", bias.astype(jnp.float32), w_exp)
    w_gate_c = w_gate.astype(weight_dtype)
    return w_gate_c, w_cat, bias_proj, d_out


def moe_adaptor_apply(x, w_gate_c, w_cat, bias_proj, *, d_out):
    """x: [B, D_in]; prepared params from prepare_moe_adaptor_params."""
    B, d_in = x.shape
    n_exps = w_gate_c.shape[1]
    d_pad = bias_proj.shape[1]
    assert w_cat.shape == (d_in, n_exps * d_pad)

    tb = _pick_batch_tile(B)
    grid = (B // tb,)

    x_itemsize = jnp.dtype(x.dtype).itemsize
    w_itemsize = jnp.dtype(w_cat.dtype).itemsize

    flops = 2 * B * d_in * n_exps * (1 + d_pad) + 4 * B * n_exps * d_pad
    bytes_accessed = (x.size * x_itemsize
                      + w_gate_c.size * w_itemsize
                      + w_cat.size * w_itemsize
                      + bias_proj.size * 4
                      + B * d_pad * x_itemsize)
    cost = pl.CostEstimate(flops=int(flops),
                           transcendentals=int(B * n_exps),
                           bytes_accessed=int(bytes_accessed))

    kernel = functools.partial(moe_adaptor_kernel, n_exps=n_exps, d_pad=d_pad)

    out_padded = pl.pallas_call(
        kernel,
        out_shape=jax.ShapeDtypeStruct((B, d_pad), x.dtype),
        grid_spec=pltpu.PrefetchScalarGridSpec(
            num_scalar_prefetch=0,
            grid=grid,
            in_specs=[
                pl.BlockSpec((tb, d_in), lambda i: (i, 0)),             # x tile
                # Constant index_maps: blocks are revisited, so the weight DMAs
                # are not re-issued across batch grid steps.
                pl.BlockSpec((d_in, n_exps), lambda i: (0, 0)),          # w_gate
                pl.BlockSpec((d_in, n_exps * d_pad), lambda i: (0, 0)),  # w_cat
                pl.BlockSpec((n_exps, d_pad), lambda i: (0, 0)),         # bias_proj
            ],
            out_specs=pl.BlockSpec((tb, d_pad), lambda i: (i, 0)),
        ),
        compiler_params=pltpu.CompilerParams(
            dimension_semantics=("parallel",),
            vmem_limit_bytes=_vmem_limit_bytes(tb, d_in, n_exps, d_pad,
                                               x_itemsize, w_itemsize)),
        cost_estimate=cost,
    )(x, w_gate_c, w_cat, bias_proj)

    if d_pad == d_out:
        return out_padded
    # Callers that can consume a lane-padded feature dim should skip this slice.
    return out_padded[:, :d_out]


def moe_adaptor_forward(x, w_gate, bias, w_experts, weight_dtype=jnp.bfloat16):
    """Convenience wrapper: prep + apply.  Prefer calling prepare_* once and
    jitting only moe_adaptor_apply in a training/inference step."""
    w_gate_c, w_cat, bias_proj, d_out = prepare_moe_adaptor_params(
        w_gate, bias, w_experts, weight_dtype)
    return moe_adaptor_apply(x, w_gate_c, w_cat, bias_proj, d_out=d_out)


def moe_adaptor_reference(x, w_gate, bias, w_experts):
    gates = jax.nn.softmax(
        x.astype(jnp.float32) @ w_gate.astype(jnp.float32), axis=-1)
    expert_outputs = jnp.einsum(
        "bed,edo->beo",
        x.astype(jnp.float32)[:, None, :] - bias.astype(jnp.float32)[None, :, :],
        w_experts.astype(jnp.float32),
    )
    return jnp.sum(gates[..., None] * expert_outputs, axis=-2).astype(x.dtype)


if __name__ == "__main__":
    # Small shapes consistent with MoEAdaptorLayer(n_exps=4, layers=[32, 16]).
    B, D_in, D_out, E = 16, 32, 16, 4

    key = jax.random.PRNGKey(0)
    kx, kg, kb, kw = jax.random.split(key, 4)

    x = jax.random.normal(kx, (B, D_in), dtype=jnp.float32)
    # Module init uses zeros for w_gate/bias and N(0, 0.02) for Linear weights;
    # use small deterministic random values so the softmax/bias paths are exercised.
    w_gate = 0.1 * jax.random.normal(kg, (D_in, E), dtype=jnp.float32)
    bias = 0.1 * jax.random.normal(kb, (E, D_in), dtype=jnp.float32)
    w_experts = 0.02 * jax.random.normal(kw, (E, D_in, D_out), dtype=jnp.float32)

    # One-time weight preparation (hoisted), then a jitted apply.
    w_gate_c, w_cat, bias_proj, d_out = prepare_moe_adaptor_params(
        w_gate, bias, w_experts)
    apply_fn = jax.jit(functools.partial(moe_adaptor_apply, d_out=d_out))

    out = jax.block_until_ready(apply_fn(x, w_gate_c, w_cat, bias_proj))

    ref = moe_adaptor_reference(x, w_gate, bias, w_experts)
    assert out.shape == (B, D_out)
    err = float(jnp.max(jnp.abs(out - ref)))
    # bf16 expert/gate weights with f32 accumulation: a few e-4 absolute error
    # at these magnitudes; tolerance set accordingly.
    assert jnp.allclose(out, ref, atol=5e-3, rtol=1e-2), (
        f"mismatch vs reference (max abs err={err})")

    print("KERNEL_OK")
</pallas_src>

<mosaic_0001>
module attributes {stable_mosaic.version = 11 : i64} {
  func.func @moe_adaptor_kernel(%arg0: i32, %arg1: memref<16x32xf32, #tpu.memory_space<vmem>>, %arg2: memref<32x4xbf16, #tpu.memory_space<vmem>>, %arg3: memref<32x512xbf16, #tpu.memory_space<vmem>>, %arg4: memref<4x128xf32, #tpu.memory_space<vmem>>, %arg5: memref<16x128xf32, #tpu.memory_space<vmem>>) attributes {dimension_semantics = [#tpu.dimension_semantics<parallel>], iteration_bounds = array<i64: 1>, scalar_prefetch = 0 : i64, scratch_operands = 0 : i64, tpu.core_type = #tpu.core_type<tc>, window_params = [{transform_indices = @transform_0, window_bounds = array<i64: 16, 32>}, {pipeline_mode = #tpu.pipeline_mode<synchronous>, transform_indices = @transform_1, window_bounds = array<i64: 32, 4>}, {pipeline_mode = #tpu.pipeline_mode<synchronous>, transform_indices = @transform_2, window_bounds = array<i64: 32, 512>}, {pipeline_mode = #tpu.pipeline_mode<synchronous>, transform_indices = @transform_3, window_bounds = array<i64: 4, 128>}, {transform_indices = @transform_4, window_bounds = array<i64: 16, 128>}]} {
    %c0 = arith.constant 0 : index
    %c0_0 = arith.constant 0 : index
    %0 = vector.load %arg1[%c0, %c0_0] : memref<16x32xf32, #tpu.memory_space<vmem>>, vector<16x32xf32>
    %1 = arith.truncf %0 : vector<16x32xf32> to vector<16x32xbf16>
    %c0_1 = arith.constant 0 : index
    %c0_2 = arith.constant 0 : index
    %2 = vector.load %arg2[%c0_1, %c0_2] : memref<32x4xbf16, #tpu.memory_space<vmem>>, vector<32x4xbf16>
    %cst = arith.constant dense<0.000000e+00> : vector<16x4xf32>
    %3 = tpu.matmul %1, %2, %cst {dimension_numbers = #tpu.dot_dimension_numbers<[1], [0], [0], [1], [0, 0, 1, 1], [], []>} : vector<16x32xbf16>, vector<32x4xbf16>, vector<16x4xf32> -> vector<16x4xf32>
    %cst_3 = arith.constant dense<0xFF800000> : vector<16xf32>
    %4 = vector.multi_reduction <maximumf>, %3, %cst_3 [1] : vector<16x4xf32> to vector<16xf32>
    %5 = vector.shape_cast %4 : vector<16xf32> to vector<16x1xf32>
    %6 = vector.broadcast %5 : vector<16x1xf32> to vector<16x4xf32>
    %7 = arith.subf %3, %6 : vector<16x4xf32>
    %8 = math.exp %7 : vector<16x4xf32>
    %cst_4 = arith.constant dense<0.000000e+00> : vector<16xf32>
    %9 = vector.multi_reduction <add>, %8, %cst_4 [1] : vector<16x4xf32> to vector<16xf32>
    %10 = vector.shape_cast %9 : vector<16xf32> to vector<16x1xf32>
    %11 = tpu.reciprocal %10 : vector<16x1xf32> -> vector<16x1xf32>
    %12 = vector.broadcast %11 : vector<16x1xf32> to vector<16x4xf32>
    %13 = arith.mulf %8, %12 : vector<16x4xf32>
    %c0_5 = arith.constant 0 : index
    %c0_6 = arith.constant 0 : index
    %14 = vector.load %arg3[%c0_5, %c0_6] : memref<32x512xbf16, #tpu.memory_space<vmem>>, vector<32x512xbf16>
    %cst_7 = arith.constant dense<0.000000e+00> : vector<16x512xf32>
    %15 = tpu.matmul %1, %14, %cst_7 {dimension_numbers = #tpu.dot_dimension_numbers<[1], [0], [0], [1], [0, 0, 1, 1], [], []>} : vector<16x32xbf16>, vector<32x512xbf16>, vector<16x512xf32> -> vector<16x512xf32>
    %16 = vector.extract_strided_slice %13 {offsets = [0, 0], sizes = [16, 1], strides = [1, 1]} : vector<16x4xf32> to vector<16x1xf32>
    %17 = vector.extract_strided_slice %15 {offsets = [0, 0], sizes = [16, 128], strides = [1, 1]} : vector<16x512xf32> to vector<16x128xf32>
    %18 = vector.broadcast %16 : vector<16x1xf32> to vector<16x128xf32>
    %19 = arith.mulf %18, %17 : vector<16x128xf32>
    %20 = vector.extract_strided_slice %13 {offsets = [0, 1], sizes = [16, 1], strides = [1, 1]} : vector<16x4xf32> to vector<16x1xf32>
    %21 = vector.extract_strided_slice %15 {offsets = [0, 128], sizes = [16, 128], strides = [1, 1]} : vector<16x512xf32> to vector<16x128xf32>
    %22 = vector.broadcast %20 : vector<16x1xf32> to vector<16x128xf32>
    %23 = arith.mulf %22, %21 : vector<16x128xf32>
    %24 = arith.addf %19, %23 : vector<16x128xf32>
    %25 = vector.extract_strided_slice %13 {offsets = [0, 2], sizes = [16, 1], strides = [1, 1]} : vector<16x4xf32> to vector<16x1xf32>
    %26 = vector.extract_strided_slice %15 {offsets = [0, 256], sizes = [16, 128], strides = [1, 1]} : vector<16x512xf32> to vector<16x128xf32>
    %27 = vector.broadcast %25 : vector<16x1xf32> to vector<16x128xf32>
    %28 = arith.mulf %27, %26 : vector<16x128xf32>
    %29 = arith.addf %24, %28 : vector<16x128xf32>
    %30 = vector.extract_strided_slice %13 {offsets = [0, 3], sizes = [16, 1], strides = [1, 1]} : vector<16x4xf32> to vector<16x1xf32>
    %31 = vector.extract_strided_slice %15 {offsets = [0, 384], sizes = [16, 128], strides = [1, 1]} : vector<16x512xf32> to vector<16x128xf32>
    %32 = vector.broadcast %30 : vector<16x1xf32> to vector<16x128xf32>
    %33 = arith.mulf %32, %31 : vector<16x128xf32>
    %34 = arith.addf %29, %33 : vector<16x128xf32>
    %c0_8 = arith.constant 0 : index
    %c0_9 = arith.constant 0 : index
    %35 = vector.load %arg4[%c0_8, %c0_9] : memref<4x128xf32, #tpu.memory_space<vmem>>, vector<4x128xf32>
    %cst_10 = arith.constant dense<0.000000e+00> : vector<16x128xf32>
    %36 = tpu.matmul %13, %35, %cst_10 {dimension_numbers = #tpu.dot_dimension_numbers<[1], [0], [0], [1], [0, 0, 1, 1], [], []>} : vector<16x4xf32>, vector<4x128xf32>, vector<16x128xf32> -> vector<16x128xf32>
    %37 = arith.subf %34, %36 : vector<16x128xf32>
    %c0_11 = arith.constant 0 : index
    %c0_12 = arith.constant 0 : index
    %38 = vector.load %arg5[%c0_11, %c0_12] : memref<16x128xf32, #tpu.memory_space<vmem>>, vector<16x128xf32>
    tpu.vector_store %arg5[%c0_11, %c0_12], %37 {strides = array<i32>} : memref<16x128xf32, #tpu.memory_space<vmem>>, vector<16x128xf32>,
    return
  }
  func.func @transform_0(%arg0: i32) -> (i32, i32) {
    %c0_i32 = arith.constant 0 : i32
    %c0_i32_0 = arith.constant 0 : i32
    return %arg0, %c0_i32 : i32, i32
  }
  func.func @transform_1(%arg0: i32) -> (i32, i32) {
    %c0_i32 = arith.constant 0 : i32
    %c0_i32_0 = arith.constant 0 : i32
    %c0_i32_1 = arith.constant 0 : i32
    return %c0_i32, %c0_i32_0 : i32, i32
  }
  func.func @transform_2(%arg0: i32) -> (i32, i32) {
    %c0_i32 = arith.constant 0 : i32
    %c0_i32_0 = arith.constant 0 : i32
    %c0_i32_1 = arith.constant 0 : i32
    return %c0_i32, %c0_i32_0 : i32, i32
  }
  func.func @transform_3(%arg0: i32) -> (i32, i32) {
    %c0_i32 = arith.constant 0 : i32
    %c0_i32_0 = arith.constant 0 : i32
    %c0_i32_1 = arith.constant 0 : i32
    return %c0_i32, %c0_i32_0 : i32, i32
  }
  func.func @transform_4(%arg0: i32) -> (i32, i32) {
    %c0_i32 = arith.constant 0 : i32
    %c0_i32_0 = arith.constant 0 : i32
    return %arg0, %c0_i32 : i32, i32
  }
}

</mosaic_0001>

<bundles_post_ra>
// kernel: moe_adaptor_apply.1
= control target key start
LH: loop header
LB: loop body
LE: loop exit
PB: predicated region body
PF: predicated region fallthrough
CT: control target
= control target key end

     0   :  { %9 = vsyncpa [#allocation3], 0  ;;  %s618_s0 = inlined_call_operand.vmem [shape: f32[16,32], index: 0, kind: input, shape index: {}]   ;;  %s619_s1 = inlined_call_operand.vmem [shape: bf16[32,4], index: 1, kind: input, shape index: {}]   ;;  %s620_s2 = inlined_call_operand.hbm [shape: bf16[32,512], index: 2, kind: input, shape index: {}]   ;;  %s621_s3 = inlined_call_operand.vmem [shape: f32[4,128], index: 3, kind: input, shape index: {}]   ;;  %s622_s4 = inlined_call_operand.hbm [shape: f32[16,128], index: 4, kind: output, shape index: {}]  }
   0x1   :  { %10 = vsyncpa [#allocation4], 0  ;;  %s533_s15 = smov [#allocation2]   ;;  %s485_s19 = scalar_lea.hbm %s620_s2, 1024 }
   0x2   :  { %s20_s16 = sshll.u32 %s533_s15, 4  ;;  %p486_p0 = scmp.ne.s32.totalorder %s620_s2, %s485_s19  ;;  %s21_s16 = int_to_ptr.vmem [resolvable:$true] %s20_s16 }
   0x3   :  { %p489_p1 = scmp.lt.u32.totalorder %s485_s19, %s620_s2 }
   0x5   :  { %p491_p2 = pnand %p489_p1, %p486_p0 }
   0x7   :  { %494 = shalt.err (!%p491_p2)
}
   0x8   :  { %s495_s24 = scalar_lea.vmem %s21_s16, 1024  ;;  %p500_p4 = scmp.lt.s32.totalorder %s21_s16, %s21_s16 }
   0x9   :  { %p496_p3 = scmp.ne.s32.totalorder %s21_s16, %s495_s24  ;;  %p501_p5 = scmp.lt.s32.totalorder %s495_s24, %s495_s24 }
   0xb   :  { %p502_p6 = por %p501_p5, %p500_p4 }
   0xd   :  { %p503_p7 = pnand %p502_p6, %p496_p3 }
   0xf   :  { %506 = shalt.err (!%p503_p7)
}
  0x10   :  { %s534_s25 = smov 256   ;;  %s535_s26 = smov 16  }
  0x11   :  { %26 = dma.hbm_to_vmem [thread:$0]  %s620_s2, 1024, %s21_s16, [#allocation3], %s534_s25, %s534_s25, %s535_s26  }
  0x12   :  { %529 = dma.done.wait [#allocation3], 1024  }
  0x13   :  { %530 = vsyncadd [#allocation3], 4294966272  ;;  %v536_v0 = vmov 0.0   ;;  %vm537_vm0 = vmmov 0   ;;  %v463_v1 = vld [vmem:[%s619_s1] sm:$0xff]   ;;  %v464_v2 = vld [vmem:[%s619_s1 + $0x8] sm:$0xff]  }
  0x14   :  { %429 = vmatprep.subr.bf16.mxu0 %v536_v0  ;;  %433 = vmatprep.mubr.msk.bf16.mxu0 %vm537_vm0, %v536_v0  ;;  %v33_v3 = vld [vmem:[%s618_s0] sm:$0xff]  ;;  %v34_v4 = vld [vmem:[%s618_s0 + $0x8] sm:$0xff]  ;;  %vm52_vm1 = vcmask 261120   ;;  %vm97_vm2 = vcmask 31744   ;;  %v538_v19 = vmov 0   ;;  %v539_v31 = vmov 1  }
  0x15   :  { %430 = vmatpush3.bf16.msra.mxu0 %v463_v1  ;;  %v35_v5 = vpack.c.bf16 %v34_v4, %v33_v3  ;;  %v465_v12 = vld [vmem:[#allocation2 + $0x4] ss:$16 sps:$4 sm:$0xff]   ;;  %v467_v13 = vld [vmem:[#allocation2] ss:$16 sps:$4 sm:$0xff]   ;;  %v471_v15 = vld [vmem:[#allocation2 + $0x8] ss:$16 sps:$4 sm:$0xff]   ;;  %200 = vmatprep.mubr.bf16.mxu1 %v538_v19 }
  0x16   :  { %431 = vmatprep.subr.bf16.mxu0 %v536_v0  ;;  %v468_v14 = vld [vmem:[#allocation2 + $0x24] ss:$16 sps:$4 sm:$0xff]   ;;  %v473_v16 = vld [vmem:[#allocation2 + $0xc] ss:$16 sps:$4 sm:$0xff]   ;;  %168 = vmatprep.subr.bf16.mxu1 %v465_v12  ;;  %v470_v18 = vld [vmem:[#allocation2 + $0x20] ss:$16 sps:$4 sm:$0xff]  }
  0x17   :  { %v476_v17 = vld [vmem:[#allocation2 + $0x2c] ss:$16 sps:$4 sm:$0xff]   ;;  %169 = vmatpush1.bf16.msra.mxu1 %v467_v13  ;;  %v474_v20 = vld [vmem:[#allocation2 + $0x28] ss:$16 sps:$4 sm:$0xff]   ;;  %454 = vset.pattern.permute.xlu0 %v538_v19  ;;  %v302_v32 = vld [vmem:[%s621_s3] sm:$0xf] }
  0x18   :  { %170 = vmatprep.subr.bf16.mxu1 %v468_v14  ;;  %455 = vset.pattern.permute.xlu1 %v539_v31  ;;  %vm307_vm3 = vcmask 1043456   ;;  %v540_v41 = vmov 3   ;;  %v541_v42 = vmov 2   ;;  %s542_s3 = smov [#allocation5]  }
  0x19   :  { %432 = vmatpush3.bf16.msra.mxu0 %v464_v2  ;;  %s395_s10 = sshll.u32 %s542_s3, 4  ;;  %s396_s10 = int_to_ptr.vmem [resolvable:$true] %s395_s10 }
  0x1a   :  { %211 = vmatprep.subr.bf16.mxu0 %v473_v16  ;;  %s507_s11 = scalar_lea.vmem %s396_s10, 256  ;;  %p512_p9 = scmp.lt.s32.totalorder %s396_s10, %s396_s10 }
  0x1b   :  { %171 = vmatpush1.bf16.msra.mxu1 %v470_v18  ;;  %p508_p8 = scmp.ne.s32.totalorder %s396_s10, %s507_s11  ;;  %p513_p10 = scmp.lt.s32.totalorder %s507_s11, %s507_s11 }
  0x1c   :  { %434 = vmatmul.mubr.msk.bf16.vlgmr.msra.gmra.mrb[0].mxu0 %vm52_vm1, %v35_v5  ;;  %437 = vmatprep.subr.msk.mxu1 %vm307_vm3, %v302_v32 }
  0x1d   :  { %212 = vmatpush1.bf16.msra.mxu0 %v471_v15  ;;  %243 = vmatprep.mubr.bf16.mxu0 %v538_v19  ;;  %p514_p11 = por %p513_p10, %p512_p9 }
  0x1e   :  { %213 = vmatprep.subr.bf16.mxu0 %v476_v17  ;;  %418 = vmatmul.mubr.msk.bf16.vlgmr.msra.gmra.mrb[0].mxu1 %vm52_vm1, %v35_v5 }
  0x1f   :  { %438 = vmatpush3.msk.msra.mxu1 %vm307_vm3, %v302_v32  ;;  %p515_p12 = pnand %p514_p11, %p508_p8 }
  0x21   :  { %214 = vmatpush1.bf16.msra.mxu0 %v474_v20 }
  0x24   :  { %419 = vmatmul.mubr.msk.bf16.vlgmr.msra.gmra.mrb[4].mxu0 %vm52_vm1, %v35_v5 }
  0xef   :  { %v90_v6 = vpop.f32.mrb[0].mxu0 }
  0xf0   :  { %v435_v7 = vpop.f32.mrb[1].mxu0  ;;  %v98_v8 = vsel %vm97_vm2, %v90_v6, -inf }
  0xf1   :  { %99 = vmax.xlane.f32.xlu0 %v98_v8  ;;  %v93_v9 = vpop.f32.mrb[2].mxu0  ;;  %v202_v33 = vpop.f32.mrb[0].mxu1 }
  0xf2   :  { %v436_v10 = vpop.f32.mrb[3].mxu0  ;;  %v101_v11 = vsel %vm97_vm2, %v93_v9, -inf  ;;  %v204_v34 = vpop.f32.mrb[1].mxu1 }
  0xf3   :  { %v206_v45 = vpop.f32.mrb[2].mxu1 }
  0xf4   :  { %v208_v46 = vpop.f32.mrb[3].mxu1 }
  0xf5   :  { %102 = vmax.xlane.f32.xlu0 %v101_v11 }
  0xf7   :  { %v245_v43 = vpop.f32.mrb[4].mxu0 }
  0xf8   :  { %v247_v44 = vpop.f32.mrb[5].mxu0 }
  0xf9   :  { %v249_v47 = vpop.f32.mrb[6].mxu0 }
  0xfa   :  { %v251_v48 = vpop.f32.mrb[7].mxu0 }
 0x17e   :  { %v100_v21 = vpop.xlane.xlu0 %99 }
 0x17f   :  { %v104_v22 = vsub.f32 %v90_v6, %v100_v21 }
 0x181   :  { %v106_v23 = vmul.f32 1.442695, %v104_v22 }
 0x182   :  { %v103_v24 = vpop.xlane.xlu0 %102 }
 0x183   :  { %477 = vpow2.f32 %v106_v23  ;;  %v105_v25 = vsub.f32 %v93_v9, %v103_v24 }
 0x185   :  { %v108_v26 = vmul.f32 1.442695, %v105_v25 }
 0x187   :  { %479 = vpow2.f32 %v108_v26 }
 0x18d   :  { %v478_v27 = vpop.eup %477 }
 0x18e   :  { %v110_v28 = vsel %vm97_vm2, %v478_v27, 0.0 }
 0x18f   :  { %111 = vadd.xlane.f32.xlu1 %v110_v28 }
 0x191   :  { %v480_v29 = vpop.eup %479 }
 0x192   :  { %v113_v30 = vsel %vm97_vm2, %v480_v29, 0.0 }
 0x193   :  { %114 = vadd.xlane.f32.xlu1 %v113_v30 }
 0x21c   :  { %v112_v35 = vpop.xlane.xlu1 %111 }
 0x21d   :  { %481 = vrcp.f32 %v112_v35 }
 0x220   :  { %v115_v36 = vpop.xlane.xlu1 %114 }
 0x221   :  { %483 = vrcp.f32 %v115_v36 }
 0x227   :  { %v482_v37 = vpop.eup %481 }
 0x228   :  { %v118_v38 = vmul.f32 %v482_v37, %v478_v27 }
 0x22a   :  { %439 = vmatprep.mubr.msk.f32.mxu1 %vm97_vm2, %v118_v38  ;;  %256 = vperm.xlu0 %454, %v118_v38  }
 0x22b   :  { %v484_v39 = vpop.eup %483  ;;  %267 = vperm.xlu1 %455, %v118_v38  }
 0x22c   :  { %v119_v40 = vmul.f32 %v484_v39, %v480_v29 }
 0x22e   :  { %440 = vmatmul.mubr.msk.f32.vlgmr.msra.gmra.mrb[4].mxu1 %vm97_vm2, %v119_v40  ;;  %462 = vset.pattern.permute.xlu0 %v540_v41 }
 0x22f   :  { %456 = vset.pattern.permute.xlu1 %v541_v42 }
 0x230   :  { %279 = vperm.xlu1 %456, %v118_v38  }
 0x234   :  { %457 = vset.pattern.permute.xlu1 %v540_v41 }
 0x235   :  { %291 = vperm.xlu1 %457, %v118_v38  }
 0x239   :  { %458 = vset.pattern.permute.xlu1 %v538_v19 }
 0x23a   :  { %261 = vperm.xlu1 %458, %v119_v40  }
 0x23e   :  { %459 = vset.pattern.permute.xlu1 %v539_v31 }
 0x23f   :  { %271 = vperm.xlu1 %459, %v119_v40  }
 0x243   :  { %460 = vset.pattern.permute.xlu1 %v541_v42 }
 0x244   :  { %283 = vperm.xlu1 %460, %v119_v40  }
 0x248   :  { %461 = vset.pattern.permute.xlu1 %v540_v41 }
 0x249   :  { %295 = vperm.xlu1 %461, %v119_v40  }
 0x2a9   :  { %v257_v49 = vpop.permute.xlu0 %256 }
 0x2aa   :  { %v268_v50 = vpop.permute.xlu1 %267  ;;  %v264_v51 = vmul.f32 %v257_v49, %v202_v33 }
 0x2ab   :  { %v274_v52 = vmul.f32 %v268_v50, %v204_v34 }
 0x2ad   :  { %v276_v53 = vadd.f32 %v274_v52, %v264_v51 }
 0x2af   :  { %v280_v54 = vpop.permute.xlu1 %279 }
 0x2b0   :  { %v286_v55 = vmul.f32 %v280_v54, %v245_v43 }
 0x2b2   :  { %v288_v56 = vadd.f32 %v286_v55, %v276_v53 }
 0x2b4   :  { %v292_v57 = vpop.permute.xlu1 %291 }
 0x2b5   :  { %v298_v58 = vmul.f32 %v292_v57, %v247_v44 }
 0x2b7   :  { %v300_v59 = vadd.f32 %v298_v58, %v288_v56 }
 0x2b9   :  { %v262_v60 = vpop.permute.xlu1 %261 }
 0x2ba   :  { %v265_v62 = vmul.f32 %v262_v60, %v206_v45 }
 0x2be   :  { %v272_v61 = vpop.permute.xlu1 %271 }
 0x2bf   :  { %v275_v63 = vmul.f32 %v272_v61, %v208_v46 }
 0x2c1   :  { %v277_v0 = vadd.f32 %v275_v63, %v265_v62 }
 0x2c3   :  { %v284_v1 = vpop.permute.xlu1 %283 }
 0x2c4   :  { %v287_v2 = vmul.f32 %v284_v1, %v249_v47 }
 0x2c6   :  { %v289_v3 = vadd.f32 %v287_v2, %v277_v0 }
 0x2c8   :  { %v296_v4 = vpop.permute.xlu1 %295 }
 0x2c9   :  { %v299_v5 = vmul.f32 %v296_v4, %v251_v48 }
 0x2cb   :  { %v301_v6 = vadd.f32 %v299_v5, %v289_v3 }
 0x301   :  { %v441_v7 = vpop.f32.mrb[4].mxu1 }
 0x302   :  { %v387_v8 = vsub.f32 %v301_v6, %v441_v7  ;;  %v377_v9 = vpop.f32.mrb[5].mxu1 }
 0x303   :  { %v386_v10 = vsub.f32 %v300_v59, %v377_v9 }
 0x304   :  { %389 = vst [vmem:[#allocation5 + $0x8] sm:$0xff] %v387_v8 }
 0x305   :  { %388 = vst [vmem:[#allocation5] sm:$0xff] %v386_v10 }
 0x306   :  { %518 = shalt.err (!%p515_p12)
}
 0x307   :  { %s519_s14 = scalar_lea.hbm %s622_s4, 256 }
 0x308   :  { %p520_p13 = scmp.ne.s32.totalorder %s622_s4, %s519_s14  ;;  %p523_p0 = scmp.lt.u32.totalorder %s519_s14, %s622_s4 }
 0x30a   :  { %p525_p1 = pnand %p523_p0, %p520_p13 }
 0x30c   :  { %528 = shalt.err (!%p525_p1)
}
 0x30d   :  { %s543_s19 = smov 128   ;;  %s544_s20 = smov 8  }
 0x30e   :  { %401 = dma.vmem_to_hbm [thread:$0]  %s396_s10, 256, %s622_s4, [#allocation4], %s543_s19, %s543_s19, %s544_s20  }
 0x30f   :  { %531 = dma.done.wait [#allocation4], 256  }
 0x310   :  { %532 = vsyncadd [#allocation4], 4294967040 }
 0x311   :  { %405 = vsyncpa [#allocation3], 1 }
 0x312   :  { %406 = vsyncpa [#allocation4], 1 }

</bundles_post_ra>
